<compile_context>
chip_gen: v7x
topology: tpu7x:2x2x1
jax: 0.10.0
libtpu: 0.0.40
codegen_flags: <defaults>
</compile_context>

<pallas_src>
import functools

import jax
import jax.numpy as jnp
from jax.experimental import pallas as pl
from jax.experimental.pallas import tpu as pltpu


def _round_up(x, m):
    return ((x + m - 1) // m) * m


# ---------------------------------------------------------------------------
# Pallas kernels
# ---------------------------------------------------------------------------

def _patch_embed_ln_kernel(x_ref, w_ref, b_ref, g_ref, beta_ref, o_ref, *,
                           d_real):
    # x: (TM, K) bf16 patches, w: (K, Dp) bf16 (cols >= d_real are zero),
    # b/g/beta: (1, Dp) f32 (entries >= d_real are zero).
    y = jnp.dot(x_ref[...], w_ref[...], preferred_element_type=jnp.float32)
    y = y + b_ref[...]
    dp = y.shape[-1]
    lane = jax.lax.broadcasted_iota(jnp.int32, (1, dp), 1)
    mask = (lane < d_real).astype(jnp.float32)
    # explicit lane mask so LN statistics stay correct even if a loaded
    # checkpoint puts nonzero values in padded weight columns / bias lanes.
    y = y * mask
    inv_d = 1.0 / float(d_real)
    mu = jnp.sum(y, axis=-1, keepdims=True) * inv_d
    diff = (y - mu) * mask
    var = jnp.sum(diff * diff, axis=-1, keepdims=True) * inv_d
    y_ln = diff * jax.lax.rsqrt(var + 1e-6)
    o_ref[...] = (y_ln * g_ref[...] + beta_ref[...]).astype(o_ref.dtype)


def _latent_graph_head_kernel(tok_ref, in0_ref, med0_ref, out0_ref,
                              wq_ref, wkv_ref, wo_ref,
                              head_w_ref, head_b_ref,
                              in_o_ref, med_o_ref, out_o_ref, logits_ref):
    # One batch-tile (TB elements) per grid step.
    #   tok_ref:  (TB, N, Dp) bf16 tokenized inputs
    #   in0/med0/out0: (S, Dp) f32 learned slot states (shared across batch)
    #   wq_ref/wo_ref: (3, Dp, Dp) bf16, wkv_ref: (3, Dp, 2*Dp) bf16
    #   stage order [input, mediator, output]; 1/sqrt(d) folded into W_q.
    Dp = in0_ref.shape[-1]

    def attend(states0_f32, kv_bf16, stage):
        # states0: (S, Dp) shared queries; kv: (TB, Nk, Dp) bf16 per-batch
        TB, Nk, _ = kv_bf16.shape
        S = states0_f32.shape[0]
        # Query projection is batch-independent -> compute once per step.
        q = jnp.dot(states0_f32.astype(jnp.bfloat16), wq_ref[stage],
                    preferred_element_type=jnp.float32)          # (S, Dp)
        # Fused K/V projection: one (TB*Nk, Dp) x (Dp, 2Dp) matmul.
        kv2 = kv_bf16.reshape(TB * Nk, Dp)
        kvp = jnp.dot(kv2, wkv_ref[stage],
                      preferred_element_type=jnp.float32)
        kvp = kvp.reshape(TB, Nk, 2 * Dp)
        k = kvp[..., :Dp].astype(jnp.bfloat16)                    # (TB, Nk, Dp)
        v = kvp[..., Dp:].astype(jnp.bfloat16)                    # (TB, Nk, Dp)
        qb = jnp.broadcast_to(q.astype(jnp.bfloat16)[None], (TB, S, Dp))
        s = jnp.einsum('bqd,bkd->bqk', qb, k,
                       preferred_element_type=jnp.float32)        # (TB, S, Nk)
        m = jnp.max(s, axis=-1, keepdims=True)
        p = jnp.exp(s - m)
        l = jnp.sum(p, axis=-1, keepdims=True)
        p = p * pl.reciprocal(l, approx=True)
        ctx = jnp.einsum('bqk,bkd->bqd', p.astype(jnp.bfloat16), v,
                         preferred_element_type=jnp.float32)      # (TB, S, Dp)
        upd = jnp.dot(ctx.reshape(TB * S, Dp).astype(jnp.bfloat16),
                      wo_ref[stage],
                      preferred_element_type=jnp.float32).reshape(TB, S, Dp)
        return states0_f32[None, :, :] + upd                      # f32

    tok = tok_ref[...]                                            # bf16
    inp = attend(in0_ref[...], tok, 0)
    med = attend(med0_ref[...], inp.astype(jnp.bfloat16), 1)
    out = attend(out0_ref[...], med.astype(jnp.bfloat16), 2)

    in_o_ref[...] = inp
    med_o_ref[...] = med
    out_o_ref[...] = out

    # FirstSlotAsLogits head, fused while output_states is still in VMEM.
    # Only slot 0 is consumed -> project only slot 0 (lane-dense (TB, OUTp)).
    slot0 = out[:, 0, :].astype(jnp.bfloat16)                     # (TB, Dp)
    logits_ref[...] = (jnp.dot(slot0, head_w_ref[...],
                               preferred_element_type=jnp.float32)
                       + head_b_ref[...])


# ---------------------------------------------------------------------------
# pallas_call wrappers
# ---------------------------------------------------------------------------

def patch_embed(x_nchw, w, b, gamma, beta, patch, d_real):
    """ConvNeXt patchify stem: stride-P conv as tiled matmul, then LayerNorm."""
    B, C, H, W = x_nchw.shape
    nH, nW = H // patch, W // patch
    K, Dp = w.shape
    assert K == C * patch * patch
    M = B * nH * nW
    # transpose + bf16 cast fused by XLA into one op feeding the kernel.
    patches = x_nchw.reshape(B, C, nH, patch, nW, patch)
    patches = patches.transpose(0, 2, 4, 1, 3, 5).reshape(M, K)
    patches = patches.astype(jnp.bfloat16)

    TM = min(1024, _round_up(M, 8))
    Mpad = _round_up(M, TM)
    if Mpad != M:
        patches = jnp.pad(patches, ((0, Mpad - M), (0, 0)))

    kern = functools.partial(_patch_embed_ln_kernel, d_real=d_real)
    out = pl.pallas_call(
        kern,
        out_shape=jax.ShapeDtypeStruct((Mpad, Dp), jnp.bfloat16),
        grid=(Mpad // TM,),
        in_specs=[
            pl.BlockSpec((TM, K), lambda i: (i, 0)),
            pl.BlockSpec((K, Dp), lambda i: (0, 0)),
            pl.BlockSpec((1, Dp), lambda i: (0, 0)),
            pl.BlockSpec((1, Dp), lambda i: (0, 0)),
            pl.BlockSpec((1, Dp), lambda i: (0, 0)),
        ],
        out_specs=pl.BlockSpec((TM, Dp), lambda i: (i, 0)),
        compiler_params=pltpu.CompilerParams(
            dimension_semantics=("parallel",)),
    )(patches, w, b, gamma, beta)
    return out[:M].reshape(B, nH * nW, Dp)


def latent_graph_with_head(tok_bf16, in0, med0, out0, wq, wkv, wo,
                           head_w, head_b):
    """Fused input->mediator->output cross-attention + FirstSlotAsLogits head.

    Processes TB batch elements per grid step so the per-step fixed overhead
    is amortized and the MXU sees (TB*Nk)-row LHS tiles.
    """
    B, N, Dp = tok_bf16.shape
    Si, Sm, So = in0.shape[0], med0.shape[0], out0.shape[0]
    OUTp = head_w.shape[1]

    # Small B: one step (amortize launch/step overhead on all chips).
    # Large B: TB=8 keeps >= 2 "parallel" steps for v7x's 2 TensorCores.
    TB = B if B <= 8 else 8
    Bpad = _round_up(B, TB)
    if Bpad != B:
        tok_bf16 = jnp.pad(tok_bf16, ((0, Bpad - B), (0, 0), (0, 0)))
    grid = (Bpad // TB,)

    # advisory cost estimate for XLA's scheduler
    flops = 0
    for sq, nk in ((Si, N), (Sm, Si), (So, Sm)):
        flops += (Bpad // TB) * 2 * sq * Dp * Dp      # shared q proj (per step)
        flops += Bpad * 2 * nk * Dp * (2 * Dp)        # fused kv proj
        flops += Bpad * 2 * 2 * sq * nk * Dp          # scores + ctx
        flops += Bpad * 2 * sq * Dp * Dp              # out proj
    flops += Bpad * 2 * Dp * OUTp                     # head (slot 0 only)
    trans = Bpad * (Si * N + Sm * Si + So * Sm + Si + Sm + So)
    bytes_accessed = (tok_bf16.size * 2
                      + (wq.size + wkv.size + wo.size + head_w.size) * 2
                      + (in0.size + med0.size + out0.size) * 4
                      + Bpad * (Si + Sm + So) * Dp * 4 + Bpad * OUTp * 4)

    out_shapes = (
        jax.ShapeDtypeStruct((Bpad, Si, Dp), jnp.float32),
        jax.ShapeDtypeStruct((Bpad, Sm, Dp), jnp.float32),
        jax.ShapeDtypeStruct((Bpad, So, Dp), jnp.float32),
        jax.ShapeDtypeStruct((Bpad, OUTp), jnp.float32),
    )
    in_s, med_s, out_s, logits = pl.pallas_call(
        _latent_graph_head_kernel,
        out_shape=out_shapes,
        grid=grid,
        in_specs=[
            pl.BlockSpec((TB, N, Dp), lambda i: (i, 0, 0)),
            pl.BlockSpec((Si, Dp), lambda i: (0, 0)),
            pl.BlockSpec((Sm, Dp), lambda i: (0, 0)),
            pl.BlockSpec((So, Dp), lambda i: (0, 0)),
            pl.BlockSpec((3, Dp, Dp), lambda i: (0, 0, 0)),
            pl.BlockSpec((3, Dp, 2 * Dp), lambda i: (0, 0, 0)),
            pl.BlockSpec((3, Dp, Dp), lambda i: (0, 0, 0)),
            pl.BlockSpec((Dp, OUTp), lambda i: (0, 0)),
            pl.BlockSpec((1, OUTp), lambda i: (0, 0)),
        ],
        out_specs=(
            pl.BlockSpec((TB, Si, Dp), lambda i: (i, 0, 0)),
            pl.BlockSpec((TB, Sm, Dp), lambda i: (i, 0, 0)),
            pl.BlockSpec((TB, So, Dp), lambda i: (i, 0, 0)),
            pl.BlockSpec((TB, OUTp), lambda i: (i, 0)),
        ),
        compiler_params=pltpu.CompilerParams(
            dimension_semantics=("parallel",)),
        cost_estimate=pl.CostEstimate(flops=flops, transcendentals=trans,
                                      bytes_accessed=bytes_accessed),
    )(tok_bf16, in0, med0, out0, wq, wkv, wo, head_w, head_b)
    return in_s[:B], med_s[:B], out_s[:B], logits[:B]


# ---------------------------------------------------------------------------
# NeuralCompiler (JAX / Pallas version)
# ---------------------------------------------------------------------------

class NeuralCompiler:
    def __init__(self, *, input_dim, output_dim, state_dim, patch_size=4,
                 num_input_slots=8, num_mediator_slots=8, num_output_slots=8,
                 simplified_interface=False, seed=0):
        self.input_dim = input_dim
        self.output_dim = output_dim
        self.state_dim = state_dim
        self.patch_size = patch_size
        self.simplified_interface = simplified_interface

        D = state_dim
        Dp = _round_up(D, 128)             # lane-pad state dim to 128
        OUTp = _round_up(output_dim, 128)  # lane-pad head output
        self.Dp, self.OUTp = Dp, OUTp
        K = input_dim * patch_size * patch_size

        keys = jax.random.split(jax.random.PRNGKey(seed), 20)
        nrm = lambda k, shp, s: (s * jax.random.normal(k, shp)).astype(
            jnp.float32)
        pad2 = lambda a, r, c: jnp.pad(
            a, ((0, r - a.shape[0]), (0, c - a.shape[1])))

        p = {}
        # --- input tokenizer (ConvNeXt patchify stem + LayerNorm) ---
        p['tok_w'] = pad2(nrm(keys[0], (K, D), 1.0 / K ** 0.5),
                          K, Dp).astype(jnp.bfloat16)
        p['tok_b'] = jnp.zeros((1, Dp), jnp.float32)
        p['tok_ln_g'] = pad2(jnp.ones((1, D), jnp.float32), 1, Dp)
        p['tok_ln_b'] = jnp.zeros((1, Dp), jnp.float32)
        # --- latent-graph learned slot states (padded lanes are zero) ---
        p['input_states'] = pad2(nrm(keys[1], (num_input_slots, D), 1.0),
                                 num_input_slots, Dp)
        p['mediator_states'] = pad2(nrm(keys[2], (num_mediator_slots, D), 1.0),
                                    num_mediator_slots, Dp)
        p['output_states'] = pad2(nrm(keys[3], (num_output_slots, D), 1.0),
                                  num_output_slots, Dp)
        # --- cross-attention weights: per stage [input, mediator, output] ---
        #     W_q (scale folded in), fused W_kv = [W_k | W_v], W_o
        scale = 1.0 / float(D) ** 0.5
        wq_l, wkv_l, wo_l = [], [], []
        ki = 4
        for _stage in range(3):
            wqr = nrm(keys[ki + 0], (D, D), 1.0 / D ** 0.5) * scale
            wkr = nrm(keys[ki + 1], (D, D), 1.0 / D ** 0.5)
            wvr = nrm(keys[ki + 2], (D, D), 1.0 / D ** 0.5)
            wor = nrm(keys[ki + 3], (D, D), 1.0 / D ** 0.5)
            ki += 4
            wq_l.append(pad2(wqr, Dp, Dp))
            wkv_l.append(jnp.concatenate(
                [pad2(wkr, Dp, Dp), pad2(wvr, Dp, Dp)], axis=1))
            wo_l.append(pad2(wor, Dp, Dp))
        p['attn_wq'] = jnp.stack(wq_l).astype(jnp.bfloat16)    # (3, Dp, Dp)
        p['attn_wkv'] = jnp.stack(wkv_l).astype(jnp.bfloat16)  # (3, Dp, 2Dp)
        p['attn_wo'] = jnp.stack(wo_l).astype(jnp.bfloat16)    # (3, Dp, Dp)
        # --- output tokenizer (FirstSlotAsLogits) ---
        p['head_w'] = pad2(nrm(keys[16], (D, output_dim), 1.0 / D ** 0.5),
                           Dp, OUTp).astype(jnp.bfloat16)
        p['head_b'] = jnp.zeros((1, OUTp), jnp.float32)
        self.params = p

    def __call__(self, *inputs):
        assert len(inputs) == 1
        if self.simplified_interface:
            super_inputs = dict(raw_inputs=inputs[0])
        else:
            assert isinstance(inputs[0], dict)
            super_inputs = inputs[0]

        p = self.params
        D, Dp = self.state_dim, self.Dp

        raw_inputs = super_inputs.get('raw_inputs')
        if raw_inputs is not None:
            tok_bf16 = patch_embed(raw_inputs, p['tok_w'], p['tok_b'],
                                   p['tok_ln_g'], p['tok_ln_b'],
                                   self.patch_size, D)
            tokenized_out = tok_bf16[..., :D].astype(jnp.float32)
        else:
            assert 'tokenized_inputs' in super_inputs
            ti = super_inputs['tokenized_inputs']
            assert ti.ndim == 3
            tok_bf16 = jnp.pad(ti.astype(jnp.bfloat16),
                               ((0, 0), (0, 0), (0, Dp - ti.shape[-1])))
            tokenized_out = ti
        assert tok_bf16.ndim == 3

        in_s, med_s, out_s, logits = latent_graph_with_head(
            tok_bf16, p['input_states'], p['mediator_states'],
            p['output_states'], p['attn_wq'], p['attn_wkv'], p['attn_wo'],
            p['head_w'], p['head_b'])

        outputs = logits[:, :self.output_dim]   # FirstSlotAsLogits
        result = dict(
            raw_inputs=raw_inputs,
            tokenized_inputs=tokenized_out,
            outputs=outputs,
            input_states=in_s[..., :D],
            mediator_states=med_s[..., :D],
            output_states=out_s[..., :D],
        )
        return outputs if self.simplified_interface else result


# ---------------------------------------------------------------------------
# Main
# ---------------------------------------------------------------------------

if __name__ == "__main__":
    key = jax.random.PRNGKey(0)
    B, C, H, W = 2, 4, 16, 16
    state_dim, output_dim = 32, 10
    x = jax.random.normal(key, (B, C, H, W), dtype=jnp.float32)

    model = NeuralCompiler(input_dim=C, output_dim=output_dim,
                           state_dim=state_dim, patch_size=4,
                           simplified_interface=False, seed=0)

    out = model(dict(raw_inputs=x))
    jax.block_until_ready(out['outputs'])

    assert out['tokenized_inputs'].shape == (B, 16, state_dim)
    assert out['input_states'].shape == (B, 8, state_dim)
    assert out['mediator_states'].shape == (B, 8, state_dim)
    assert out['output_states'].shape == (B, 8, state_dim)
    assert out['outputs'].shape == (B, output_dim)
    assert bool(jnp.all(jnp.isfinite(out['outputs'])))
    assert bool(jnp.all(jnp.isfinite(out['output_states'])))

    print("KERNEL_OK")
</pallas_src>

<mosaic_0001>
module attributes {stable_mosaic.version = 11 : i64} {
  func.func @_patch_embed_ln_kernel(%arg0: i32, %arg1: memref<32x64xbf16, #tpu.memory_space<vmem>>, %arg2: memref<64x128xbf16, #tpu.memory_space<vmem>>, %arg3: memref<1x128xf32, #tpu.memory_space<vmem>>, %arg4: memref<1x128xf32, #tpu.memory_space<vmem>>, %arg5: memref<1x128xf32, #tpu.memory_space<vmem>>, %arg6: memref<32x128xbf16, #tpu.memory_space<vmem>>) attributes {dimension_semantics = [#tpu.dimension_semantics<parallel>], iteration_bounds = array<i64: 1>, scalar_prefetch = 0 : i64, scratch_operands = 0 : i64, tpu.core_type = #tpu.core_type<tc>, window_params = [{transform_indices = @transform_0, window_bounds = array<i64: 32, 64>}, {pipeline_mode = #tpu.pipeline_mode<synchronous>, transform_indices = @transform_1, window_bounds = array<i64: 64, 128>}, {pipeline_mode = #tpu.pipeline_mode<synchronous>, transform_indices = @transform_2, window_bounds = array<i64: 1, 128>}, {pipeline_mode = #tpu.pipeline_mode<synchronous>, transform_indices = @transform_3, window_bounds = array<i64: 1, 128>}, {pipeline_mode = #tpu.pipeline_mode<synchronous>, transform_indices = @transform_4, window_bounds = array<i64: 1, 128>}, {transform_indices = @transform_5, window_bounds = array<i64: 32, 128>}]} {
    %c0 = arith.constant 0 : index
    %c0_0 = arith.constant 0 : index
    %0 = vector.load %arg1[%c0, %c0_0] : memref<32x64xbf16, #tpu.memory_space<vmem>>, vector<32x64xbf16>
    %c0_1 = arith.constant 0 : index
    %c0_2 = arith.constant 0 : index
    %1 = vector.load %arg2[%c0_1, %c0_2] : memref<64x128xbf16, #tpu.memory_space<vmem>>, vector<64x128xbf16>
    %cst = arith.constant dense<0.000000e+00> : vector<32x128xf32>
    %2 = tpu.matmul %0, %1, %cst {dimension_numbers = #tpu.dot_dimension_numbers<[1], [0], [0], [1], [0, 0, 1, 1], [], []>} : vector<32x64xbf16>, vector<64x128xbf16>, vector<32x128xf32> -> vector<32x128xf32>
    %c0_3 = arith.constant 0 : index
    %c0_4 = arith.constant 0 : index
    %3 = vector.load %arg3[%c0_3, %c0_4] : memref<1x128xf32, #tpu.memory_space<vmem>>, vector<1x128xf32>
    %4 = vector.broadcast %3 : vector<1x128xf32> to vector<32x128xf32>
    %5 = arith.addf %2, %4 : vector<32x128xf32>
    %6 = tpu.iota {dimensions = array<i32: 1>} : vector<1x128xi32>
    %c32_i32 = arith.constant 32 : i32
    %7 = vector.broadcast %c32_i32 : i32 to vector<1x128xi32>
    %8 = arith.cmpi slt, %6, %7 : vector<1x128xi32>
    %9 = arith.extui %8 : vector<1x128xi1> to vector<1x128xi32>
    %10 = arith.sitofp %9 : vector<1x128xi32> to vector<1x128xf32>
    %11 = vector.broadcast %10 : vector<1x128xf32> to vector<32x128xf32>
    %12 = arith.mulf %5, %11 : vector<32x128xf32>
    %cst_5 = arith.constant dense<0.000000e+00> : vector<32xf32>
    %13 = vector.multi_reduction <add>, %12, %cst_5 [1] : vector<32x128xf32> to vector<32xf32>
    %14 = vector.shape_cast %13 : vector<32xf32> to vector<32x1xf32>
    %cst_6 = arith.constant 3.125000e-02 : f32
    %15 = vector.broadcast %cst_6 : f32 to vector<32x1xf32>
    %16 = arith.mulf %14, %15 : vector<32x1xf32>
    %17 = vector.broadcast %16 : vector<32x1xf32> to vector<32x128xf32>
    %18 = arith.subf %12, %17 : vector<32x128xf32>
    %19 = vector.broadcast %10 : vector<1x128xf32> to vector<32x128xf32>
    %20 = arith.mulf %18, %19 : vector<32x128xf32>
    %21 = arith.mulf %20, %20 : vector<32x128xf32>
    %cst_7 = arith.constant dense<0.000000e+00> : vector<32xf32>
    %22 = vector.multi_reduction <add>, %21, %cst_7 [1] : vector<32x128xf32> to vector<32xf32>
    %23 = vector.shape_cast %22 : vector<32xf32> to vector<32x1xf32>
    %cst_8 = arith.constant 3.125000e-02 : f32
    %24 = vector.broadcast %cst_8 : f32 to vector<32x1xf32>
    %25 = arith.mulf %23, %24 : vector<32x1xf32>
    %cst_9 = arith.constant 9.99999997E-7 : f32
    %26 = vector.broadcast %cst_9 : f32 to vector<32x1xf32>
    %27 = arith.addf %25, %26 : vector<32x1xf32>
    %28 = math.rsqrt %27 : vector<32x1xf32>
    %29 = vector.broadcast %28 : vector<32x1xf32> to vector<32x128xf32>
    %30 = arith.mulf %20, %29 : vector<32x128xf32>
    %c0_10 = arith.constant 0 : index
    %c0_11 = arith.constant 0 : index
    %31 = vector.load %arg4[%c0_10, %c0_11] : memref<1x128xf32, #tpu.memory_space<vmem>>, vector<1x128xf32>
    %32 = vector.broadcast %31 : vector<1x128xf32> to vector<32x128xf32>
    %33 = arith.mulf %30, %32 : vector<32x128xf32>
    %c0_12 = arith.constant 0 : index
    %c0_13 = arith.constant 0 : index
    %34 = vector.load %arg5[%c0_12, %c0_13] : memref<1x128xf32, #tpu.memory_space<vmem>>, vector<1x128xf32>
    %35 = vector.broadcast %34 : vector<1x128xf32> to vector<32x128xf32>
    %36 = arith.addf %33, %35 : vector<32x128xf32>
    %37 = arith.truncf %36 : vector<32x128xf32> to vector<32x128xbf16>
    %c0_14 = arith.constant 0 : index
    %c0_15 = arith.constant 0 : index
    %38 = vector.load %arg6[%c0_14, %c0_15] : memref<32x128xbf16, #tpu.memory_space<vmem>>, vector<32x128xbf16>
    tpu.vector_store %arg6[%c0_14, %c0_15], %37 {strides = array<i32>} : memref<32x128xbf16, #tpu.memory_space<vmem>>, vector<32x128xbf16>,
    return
  }
  func.func @transform_0(%arg0: i32) -> (i32, i32) {
    %c0_i32 = arith.constant 0 : i32
    %c0_i32_0 = arith.constant 0 : i32
    return %arg0, %c0_i32 : i32, i32
  }
  func.func @transform_1(%arg0: i32) -> (i32, i32) {
    %c0_i32 = arith.constant 0 : i32
    %c0_i32_0 = arith.constant 0 : i32
    %c0_i32_1 = arith.constant 0 : i32
    return %c0_i32, %c0_i32_0 : i32, i32
  }
  func.func @transform_2(%arg0: i32) -> (i32, i32) {
    %c0_i32 = arith.constant 0 : i32
    %c0_i32_0 = arith.constant 0 : i32
    %c0_i32_1 = arith.constant 0 : i32
    return %c0_i32, %c0_i32_0 : i32, i32
  }
  func.func @transform_3(%arg0: i32) -> (i32, i32) {
    %c0_i32 = arith.constant 0 : i32
    %c0_i32_0 = arith.constant 0 : i32
    %c0_i32_1 = arith.constant 0 : i32
    return %c0_i32, %c0_i32_0 : i32, i32
  }
  func.func @transform_4(%arg0: i32) -> (i32, i32) {
    %c0_i32 = arith.constant 0 : i32
    %c0_i32_0 = arith.constant 0 : i32
    %c0_i32_1 = arith.constant 0 : i32
    return %c0_i32, %c0_i32_0 : i32, i32
  }
  func.func @transform_5(%arg0: i32) -> (i32, i32) {
    %c0_i32 = arith.constant 0 : i32
    %c0_i32_0 = arith.constant 0 : i32
    return %arg0, %c0_i32 : i32, i32
  }
}

</mosaic_0001>

<bundles_post_ra>
// kernel: tpu_custom_call.1
= control target key start
LH: loop header
LB: loop body
LE: loop exit
PB: predicated region body
PF: predicated region fallthrough
CT: control target
= control target key end

     0   :  { %10 = vsyncpa [#allocation3], 0  ;;  %s507_s0 = inlined_call_operand.hbm [shape: bf16[32,64], index: 0, kind: input, shape index: {}]   ;;  %s508_s1 = inlined_call_operand.hbm [shape: bf16[64,128], index: 1, kind: input, shape index: {}]   ;;  %s509_s2 = inlined_call_operand.vmem [shape: f32[1,128], index: 2, kind: input, shape index: {}]   ;;  %s510_s3 = inlined_call_operand.vmem [shape: f32[1,128], index: 3, kind: input, shape index: {}]   ;;  %s511_s4 = inlined_call_operand.vmem [shape: f32[1,128], index: 4, kind: input, shape index: {}]   ;;  %s512_s5 = inlined_call_operand.hbm [shape: bf16[32,128], index: 5, kind: output, shape index: {}]  }
   0x1   :  { %11 = vsyncpa [#allocation6], 0 }
   0x2   :  { %12 = vsyncpa [#allocation4], 0  ;;  %s417_s18 = smov [#allocation2]   ;;  %s345_s22 = scalar_lea.hbm %s507_s0, 256 }
   0x3   :  { %s18_s19 = sshll.u32 %s417_s18, 4  ;;  %p346_p0 = scmp.ne.s32.totalorder %s507_s0, %s345_s22  ;;  %s19_s19 = int_to_ptr.vmem [resolvable:$true] %s18_s19 }
   0x4   :  { %p349_p1 = scmp.lt.u32.totalorder %s345_s22, %s507_s0 }
   0x6   :  { %p351_p2 = pnand %p349_p1, %p346_p0 }
   0x8   :  { %354 = shalt.err (!%p351_p2)
}
   0x9   :  { %s355_s27 = scalar_lea.vmem %s19_s19, 256  ;;  %p360_p4 = scmp.lt.s32.totalorder %s19_s19, %s19_s19 }
   0xa   :  { %p356_p3 = scmp.ne.s32.totalorder %s19_s19, %s355_s27  ;;  %p361_p5 = scmp.lt.s32.totalorder %s355_s27, %s355_s27 }
   0xc   :  { %p362_p6 = por %p361_p5, %p360_p4 }
   0xe   :  { %p363_p7 = pnand %p362_p6, %p356_p3 }
  0x10   :  { %366 = shalt.err (!%p363_p7)
}
  0x11   :  { %s418_s28 = smov 64   ;;  %s419_s29 = smov 4  }
  0x12   :  { %24 = dma.hbm_to_vmem [thread:$0]  %s507_s0, 256, %s19_s19, [#allocation3], %s418_s28, %s418_s28, %s419_s29  }
  0x13   :  { %s420_s7 = smov [#allocation5]   ;;  %s367_s11 = scalar_lea.hbm %s508_s1, 512 }
  0x14   :  { %s30_s8 = sshll.u32 %s420_s7, 4  ;;  %p368_p8 = scmp.ne.s32.totalorder %s508_s1, %s367_s11  ;;  %s31_s8 = int_to_ptr.vmem [resolvable:$true] %s30_s8 }
  0x15   :  { %p371_p9 = scmp.lt.u32.totalorder %s367_s11, %s508_s1 }
  0x17   :  { %p373_p10 = pnand %p371_p9, %p368_p8 }
  0x19   :  { %376 = shalt.err (!%p373_p10)
}
  0x1a   :  { %s377_s16 = scalar_lea.vmem %s31_s8, 512  ;;  %p382_p12 = scmp.lt.s32.totalorder %s31_s8, %s31_s8 }
  0x1b   :  { %p378_p11 = scmp.ne.s32.totalorder %s31_s8, %s377_s16  ;;  %p383_p13 = scmp.lt.s32.totalorder %s377_s16, %s377_s16 }
  0x1d   :  { %p384_p0 = por %p383_p13, %p382_p12 }
  0x1f   :  { %p385_p1 = pnand %p384_p0, %p378_p11 }
  0x21   :  { %388 = shalt.err (!%p385_p1)
}
  0x22   :  { %36 = dma.hbm_to_vmem [thread:$0]  %s508_s1, 512, %s31_s8, [#allocation6], %s418_s28, %s418_s28, %s419_s29  }
  0x23   :  { %411 = dma.done.wait [#allocation3], 256  }
  0x24   :  { %412 = vsyncadd [#allocation3], 4294967040 }
  0x25   :  { %413 = dma.done.wait [#allocation6], 512  }
  0x26   :  { %414 = vsyncadd [#allocation6], 4294966784  ;;  %v331_v0 = vld [vmem:[#allocation5] sm:$0xff]   ;;  %v332_v1 = vld [vmem:[#allocation5 + $0x8] sm:$0xff]   ;;  %vm103_vm0 = vcmask 523264   ;;  %v159_v6 = vlaneseq  ;;  %v421_v10 = vmov 0.0  }
  0x27   :  { %313 = vmatprep.subr.bf16.mxu0 %v331_v0  ;;  %v333_v2 = vld [vmem:[#allocation5 + $0x10] sm:$0xff]   ;;  %v334_v4 = vld [vmem:[#allocation5 + $0x18] sm:$0xff]   ;;  %s422_s22 = smov [#allocation7]  }
  0x28   :  { %314 = vmatpush3.bf16.msra.mxu0 %v331_v0  ;;  %v335_v3 = vld [vmem:[#allocation2] sm:$0xff]   ;;  %v336_v5 = vld [vmem:[#allocation2 + $0x8] sm:$0xff]   ;;  %v160_v7 = vand.u32 127, %v159_v6  ;;  %s263_s23 = sshll.u32 %s422_s22, 4  ;;  %s264_s23 = int_to_ptr.vmem [resolvable:$true] %s263_s23 }
  0x29   :  { %315 = vmatprep.subr.bf16.mxu0 %v332_v1  ;;  %321 = vmatprep.mubr.msk.bf16.mxu0 %vm103_vm0, %v335_v3  ;;  %v276_v8 = vld [vmem:[%s509_s2] ss:$0 sm:$0xff]  ;;  %p394_p3 = scmp.lt.s32.totalorder %s264_s23, %s264_s23 }
  0x2a   :  { %vm161_vm1 = vcmp.lt.s32.totalorder %v160_v7, 32  ;;  %v286_v57 = vld [vmem:[%s510_s3] ss:$0 sm:$0xff]  ;;  %s389_s3 = scalar_lea.vmem %s264_s23, 256 }
  0x2b   :  { %v285_v11 = vsel %vm161_vm1, 1.0, %v421_v10  ;;  %v287_v63 = vld [vmem:[%s511_s4] ss:$0 sm:$0xff]  ;;  %p390_p2 = scmp.ne.s32.totalorder %s264_s23, %s389_s3  ;;  %p395_p4 = scmp.lt.s32.totalorder %s389_s3, %s389_s3 }
  0x2c   :  { %316 = vmatpush3.bf16.msra.mxu0 %v332_v1 }
  0x2d   :  { %317 = vmatprep.subr.bf16.mxu0 %v333_v2  ;;  %p396_p5 = por %p395_p4, %p394_p3 }
  0x2f   :  { %p397_p6 = pnand %p396_p5, %p390_p2 }
  0x30   :  { %318 = vmatpush3.bf16.msra.mxu0 %v333_v2 }
  0x31   :  { %319 = vmatprep.subr.bf16.mxu0 %v334_v4 }
  0x34   :  { %320 = vmatpush3.bf16.msra.mxu0 %v334_v4 }
  0x37   :  { %322 = vmatmul.mubr.msk.bf16.vlgmr.msra.gmra.mrb[0].mxu0 %vm103_vm0, %v336_v5 }
 0x10a   :  { %v323_v9 = vpop.f32.mrb[0].mxu0 }
 0x10b   :  { %v153_v12 = vadd.f32 %v323_v9, %v276_v8  ;;  %v144_v13 = vpop.f32.mrb[1].mxu0 }
 0x10c   :  { %v145_v14 = vadd.f32 %v276_v8, %v144_v13  ;;  %v324_v15 = vpop.f32.mrb[2].mxu0 }
 0x10d   :  { %v156_v16 = vadd.f32 %v324_v15, %v276_v8  ;;  %v147_v17 = vpop.f32.mrb[3].mxu0  ;;  %v166_v18 = vmul.f32 %v285_v11, %v153_v12 }
 0x10e   :  { %v148_v19 = vadd.f32 %v276_v8, %v147_v17  ;;  %v164_v20 = vmul.f32 %v285_v11, %v145_v14 }
 0x10f   :  { %172 = vadd.xlane.f32.xlu1 %v166_v18  ;;  %v167_v21 = vmul.f32 %v285_v11, %v156_v16 }
 0x110   :  { %168 = vadd.xlane.f32.xlu0 %v164_v20  ;;  %v165_v22 = vmul.f32 %v285_v11, %v148_v19 }
 0x113   :  { %174 = vadd.xlane.f32.xlu1 %v167_v21 }
 0x114   :  { %170 = vadd.xlane.f32.xlu0 %v165_v22 }
 0x19c   :  { %v173_v23 = vpop.xlane.xlu1 %172 }
 0x19d   :  { %v178_v24 = vmul.f32 0.03125, %v173_v23  ;;  %v169_v25 = vpop.xlane.xlu0 %168 }
 0x19e   :  { %v176_v26 = vmul.f32 0.03125, %v169_v25 }
 0x19f   :  { %v182_v27 = vsub.f32 %v166_v18, %v178_v24 }
 0x1a0   :  { %v180_v28 = vsub.f32 %v164_v20, %v176_v26  ;;  %v175_v29 = vpop.xlane.xlu1 %174 }
 0x1a1   :  { %v179_v30 = vmul.f32 0.03125, %v175_v29  ;;  %v171_v31 = vpop.xlane.xlu0 %170  ;;  %v186_v37 = vmul.f32 %v285_v11, %v182_v27 }
 0x1a2   :  { %v177_v32 = vmul.f32 0.03125, %v171_v31  ;;  %v184_v33 = vmul.f32 %v285_v11, %v180_v28 }
 0x1a3   :  { %v183_v34 = vsub.f32 %v167_v21, %v179_v30  ;;  %v190_v39 = vmul.f32 %v186_v37, %v186_v37 }
 0x1a4   :  { %v181_v35 = vsub.f32 %v165_v22, %v177_v32  ;;  %v188_v36 = vmul.f32 %v184_v33, %v184_v33 }
 0x1a5   :  { %v187_v41 = vmul.f32 %v285_v11, %v183_v34 }
 0x1a6   :  { %192 = vadd.xlane.f32.xlu0 %v188_v36  ;;  %v185_v38 = vmul.f32 %v285_v11, %v181_v35 }
 0x1a7   :  { %v191_v42 = vmul.f32 %v187_v41, %v187_v41 }
 0x1a8   :  { %v189_v40 = vmul.f32 %v185_v38, %v185_v38 }
 0x1aa   :  { %196 = vadd.xlane.f32.xlu0 %v190_v39  ;;  %194 = vadd.xlane.f32.xlu1 %v189_v40 }
 0x1ae   :  { %198 = vadd.xlane.f32.xlu1 %v191_v42 }
 0x233   :  { %v193_v43 = vpop.xlane.xlu0 %192 }
 0x234   :  { %v200_v44 = vmul.f32 0.03125, %v193_v43 }
 0x236   :  { %v204_v45 = vadd.f32 1e-06, %v200_v44 }
 0x237   :  { %v195_v46 = vpop.xlane.xlu1 %194  ;;  %v197_v47 = vpop.xlane.xlu0 %196 }
 0x238   :  { %337 = vrsqrt.f32 %v204_v45  ;;  %v201_v48 = vmul.f32 0.03125, %v195_v46  ;;  %v202_v49 = vmul.f32 0.03125, %v197_v47 }
 0x23a   :  { %v205_v50 = vadd.f32 1e-06, %v201_v48  ;;  %v206_v51 = vadd.f32 1e-06, %v202_v49 }
 0x23b   :  { %v199_v52 = vpop.xlane.xlu1 %198 }
 0x23c   :  { %339 = vrsqrt.f32 %v205_v50  ;;  %v203_v53 = vmul.f32 0.03125, %v199_v52 }
 0x23d   :  { %341 = vrsqrt.f32 %v206_v51 }
 0x23e   :  { %v207_v54 = vadd.f32 1e-06, %v203_v53 }
 0x240   :  { %343 = vrsqrt.f32 %v207_v54 }
 0x242   :  { %v338_v55 = vpop.eup %337 }
 0x243   :  { %v212_v56 = vmul.f32 %v338_v55, %v184_v33 }
 0x245   :  { %v223_v61 = vmul.f32 %v286_v57, %v212_v56 }
 0x246   :  { %v340_v58 = vpop.eup %339 }
 0x247   :  { %v342_v59 = vpop.eup %341  ;;  %v213_v60 = vmul.f32 %v340_v58, %v185_v38  ;;  %v234_v4 = vadd.f32 %v287_v63, %v223_v61 }
 0x248   :  { %v214_v62 = vmul.f32 %v342_v59, %v186_v37 }
 0x249   :  { %v224_v0 = vmul.f32 %v286_v57, %v213_v60 }
 0x24a   :  { %v344_v1 = vpop.eup %343  ;;  %v225_v3 = vmul.f32 %v286_v57, %v214_v62 }
 0x24b   :  { %v215_v2 = vmul.f32 %v344_v1, %v187_v41  ;;  %v235_v5 = vadd.f32 %v287_v63, %v224_v0 }
 0x24c   :  { %v236_v8 = vadd.f32 %v287_v63, %v225_v3 }
 0x24d   :  { %v226_v6 = vmul.f32 %v286_v57, %v215_v2  ;;  %v299_v7 = vpack.c.bf16 %v235_v5, %v234_v4 }
 0x24f   :  { %v237_v9 = vadd.f32 %v287_v63, %v226_v6  ;;  %300 = vst [vmem:[#allocation7] sm:$0xff] %v299_v7  }
 0x251   :  { %v304_v10 = vpack.c.bf16 %v237_v9, %v236_v8 }
 0x253   :  { %306 = vst [vmem:[#allocation7 + $0x8] sm:$0xff] %v304_v10  }
 0x254   :  { %400 = shalt.err (!%p397_p6)
}
 0x255   :  { %s401_s25 = scalar_lea.hbm %s512_s5, 256 }
 0x256   :  { %p402_p7 = scmp.ne.s32.totalorder %s512_s5, %s401_s25  ;;  %p405_p8 = scmp.lt.u32.totalorder %s401_s25, %s512_s5 }
 0x258   :  { %p407_p9 = pnand %p405_p8, %p402_p7 }
 0x25a   :  { %410 = shalt.err (!%p407_p9)
}
 0x25b   :  { %269 = dma.vmem_to_hbm [thread:$0]  %s264_s23, 256, %s512_s5, [#allocation4], %s418_s28, %s418_s28, %s419_s29  }
 0x25c   :  { %415 = dma.done.wait [#allocation4], 256  }
 0x25d   :  { %416 = vsyncadd [#allocation4], 4294967040 }
 0x25e   :  { %273 = vsyncpa [#allocation3], 1 }
 0x25f   :  { %274 = vsyncpa [#allocation6], 1 }
 0x260   :  { %275 = vsyncpa [#allocation4], 1 }

</bundles_post_ra>
